<compile_context>
chip_gen: v6e
topology: v6e:2x2x1
jax: 0.10.0
libtpu: 0.0.40
codegen_flags: <defaults>
</compile_context>

<pallas_src>
import jax
import jax.numpy as jnp
from jax.experimental import pallas as pl
from jax.experimental.pallas import tpu as pltpu


def attention_head_kernel(x_ref, wqkv_ref, bqkv_ref, bias_ref, o_ref):
    bt, s, din = x_ref.shape
    dpad = wqkv_ref.shape[1] // 3

    # Fused QKV projection: one (Bt*S, Din) @ (Din, 3*Dpad) MXU matmul, bf16 feed,
    # f32 accumulation.  S is a sublane multiple so the reshapes are free views.
    x2 = x_ref[...].reshape(bt * s, din).astype(jnp.bfloat16)
    qkv = jnp.dot(x2, wqkv_ref[...],
                  preferred_element_type=jnp.float32) + bqkv_ref[...]   # (Bt*S, 3*Dpad) f32

    # Lane slices at 128-aligned offsets (Dpad % 128 == 0) -> zero-cost views.
    q = qkv[:, 0 * dpad:1 * dpad].reshape(bt, s, dpad)   # 1/sqrt(S) already folded in
    k = qkv[:, 1 * dpad:2 * dpad].reshape(bt, s, dpad)
    v = qkv[:, 2 * dpad:3 * dpad].reshape(bt, s, dpad)

    # scores = (q/sqrt(S)) @ k^T — batched contraction over the feature dim (no k.T).
    scores = jax.lax.dot_general(
        q.astype(jnp.bfloat16), k.astype(jnp.bfloat16),
        dimension_numbers=(((2,), (2,)), ((0,), (0,))),
        preferred_element_type=jnp.float32)              # (Bt, S, S)

    # masked_fill_(mask, -1e9) expressed as an additive bias (bf16 stream, -1e9 on
    # masked positions, 0 elsewhere) -> single VPU add.
    scores = scores + bias_ref[...]

    # Numerically-stable softmax; normalization deferred until after the PV matmul.
    m = jnp.max(scores, axis=-1, keepdims=True)
    e = jnp.exp(scores - m)                              # (Bt, S, S) f32
    denom = jnp.sum(e, axis=-1, keepdims=True)           # (Bt, S, 1)

    # context = e @ v, normalized afterwards on the (S, Dpad) side.
    ctx = jax.lax.dot_general(
        e.astype(jnp.bfloat16), v.astype(jnp.bfloat16),
        dimension_numbers=(((2,), (1,)), ((0,), (0,))),
        preferred_element_type=jnp.float32)              # (Bt, S, Dpad)

    o_ref[...] = ctx * pl.reciprocal(denom, approx=True)


def _device_info():
    """(num_tensorcores_per_chip, per-core VMEM budget in bytes)."""
    try:
        kind = jax.devices()[0].device_kind.lower()
    except Exception:
        kind = ""
    if "v7" in kind or "7x" in kind:
        return 2, 56 * 1024 * 1024        # 2 TC/chip, 64 MiB physical per TC
    if "v4" in kind:
        return 2, 100 * 1024 * 1024       # megacore, 128 MiB physical
    return 1, 100 * 1024 * 1024           # v5e / v6e: 1 TC, 128 MiB physical


def _vmem_bytes_per_step(bt, s, din, dpad):
    """Rough per-grid-step VMEM model (double-buffered streams + intermediates)."""
    bf16, f32 = 2, 4
    stream = 2 * bt * s * din * f32            # x block (f32)
    stream += 2 * bt * s * s * bf16            # mask-bias block (bf16)
    stream += 2 * bt * s * dpad * f32          # output block (f32)
    stream += 2 * din * 3 * dpad * bf16        # fused weights (bf16)
    stream += 2 * 3 * dpad * f32               # fused bias
    inter = bt * s * 3 * dpad * f32            # qkv accumulator
    inter += 3 * bt * s * dpad * (f32 + bf16)  # q/k/v views + bf16 MXU copies
    inter += 3 * bt * s * s * f32              # scores / e / softmax temporaries
    inter += bt * s * s * bf16                 # e in bf16
    inter += bt * s * dpad * f32               # ctx
    return int(1.5 * (stream + inter))         # fudge factor for layout padding


def _pick_batch_tile(B, S, Din, Dpad, num_cores, vmem_budget):
    """Largest Bt dividing B that fits the VMEM budget and keeps every TC busy
    (grid length a multiple of num_cores; one big step on single-core chips)."""
    best = 1
    for bt in range(1, B + 1):
        if B % bt:
            continue
        steps = B // bt
        if steps < num_cores:
            continue
        if num_cores > 1 and steps % num_cores:
            continue
        if _vmem_bytes_per_step(bt, S, Din, Dpad) > vmem_budget:
            continue
        best = bt
    return best


def attention_head(x, wq, bq, wk, bk, wv, bv, attention_mask, *, batch_tile=None):
    """x: (B, S, Din) f32; attention_mask: (B, S, S) bool/int (True/nonzero == masked)."""
    B, S, Din = x.shape
    Dout = wq.shape[1]
    # Matches the PyTorch module: scale = query.size(1) ** 0.5 == sqrt(seq_len).
    inv_scale = 1.0 / (float(S) ** 0.5)

    # Pad projection width to a 128-lane multiple: aligned q/k/v slices + lane-dense
    # output.  Padded columns are exactly zero and sliced off below.
    Dpad = ((Dout + 127) // 128) * 128

    def pad_cols(w):
        return jnp.pad(w, ((0, 0), (0, Dpad - Dout)))

    def pad_vec(b):
        return jnp.pad(b, ((0, Dpad - Dout),))

    # Fuse Q/K/V params once in the wrapper; fold inv_scale into the Q projection.
    w_qkv = jnp.concatenate(
        [pad_cols(wq) * inv_scale, pad_cols(wk), pad_cols(wv)], axis=1
    ).astype(jnp.bfloat16)                                            # (Din, 3*Dpad)
    b_qkv = jnp.concatenate(
        [pad_vec(bq) * inv_scale, pad_vec(bk), pad_vec(bv)], axis=0
    ).reshape(1, 3 * Dpad).astype(jnp.float32)

    # Additive mask bias: -1e9 where masked, 0 elsewhere (bf16 stream = 2 bytes/elem).
    mask_bias = jnp.where(attention_mask, jnp.float32(-1e9),
                          jnp.float32(0.0)).astype(jnp.bfloat16)

    num_cores, vmem_budget = _device_info()
    Bt = batch_tile if batch_tile is not None else _pick_batch_tile(
        B, S, Din, Dpad, num_cores, vmem_budget)
    assert B % Bt == 0, "batch_tile must divide the batch dimension"

    grid_spec = pltpu.PrefetchScalarGridSpec(
        num_scalar_prefetch=0,
        grid=(B // Bt,),
        in_specs=[
            pl.BlockSpec((Bt, S, Din), lambda b: (b, 0, 0)),       # x (f32)
            pl.BlockSpec((Din, 3 * Dpad), lambda b: (0, 0)),       # fused W_qkv (bf16)
            pl.BlockSpec((1, 3 * Dpad), lambda b: (0, 0)),         # fused b_qkv (f32)
            pl.BlockSpec((Bt, S, S), lambda b: (b, 0, 0)),         # mask bias (bf16)
        ],
        out_specs=pl.BlockSpec((Bt, S, Dpad), lambda b: (b, 0, 0)),
    )

    out = pl.pallas_call(
        attention_head_kernel,
        out_shape=jax.ShapeDtypeStruct((B, S, Dpad), jnp.float32),
        grid_spec=grid_spec,
        compiler_params=pltpu.CompilerParams(
            dimension_semantics=("parallel",),
            vmem_limit_bytes=int(vmem_budget),
        ),
    )(x, w_qkv, b_qkv, mask_bias)

    return out[:, :, :Dout]


def reference(x, wq, bq, wk, bk, wv, bv, mask):
    """Pure-JAX f32 reference with the exact PyTorch-module semantics."""
    q = x @ wq + bq
    k = x @ wk + bk
    v = x @ wv + bv
    scale = x.shape[1] ** 0.5
    scores = jnp.einsum("bqd,bkd->bqk", q, k) / scale
    scores = jnp.where(mask, -1e9, scores)
    attn = jax.nn.softmax(scores, axis=-1)
    return jnp.einsum("bqk,bkd->bqd", attn, v)


if __name__ == "__main__":
    B, S, dim_inp, dim_out = 2, 8, 32, 32

    key = jax.random.PRNGKey(0)
    kx, kq, kbq, kk, kbk, kv, kbv, km = jax.random.split(key, 8)

    x = jax.random.normal(kx, (B, S, dim_inp), dtype=jnp.float32)
    # Deterministic "Linear" params (uniform init, like torch default scale 1/sqrt(fan_in)).
    bound = 1.0 / (dim_inp ** 0.5)
    wq = jax.random.uniform(kq,  (dim_inp, dim_out), jnp.float32, -bound, bound)
    bq = jax.random.uniform(kbq, (dim_out,),         jnp.float32, -bound, bound)
    wk = jax.random.uniform(kk,  (dim_inp, dim_out), jnp.float32, -bound, bound)
    bk = jax.random.uniform(kbk, (dim_out,),         jnp.float32, -bound, bound)
    wv = jax.random.uniform(kv,  (dim_inp, dim_out), jnp.float32, -bound, bound)
    bv = jax.random.uniform(kbv, (dim_out,),         jnp.float32, -bound, bound)

    # Boolean attention mask (True == masked out).  Keep the diagonal unmasked so no
    # row is fully masked (where the additive-bias form would differ from masked_fill).
    attention_mask = jax.random.bernoulli(km, p=0.2, shape=(B, S, S))
    attention_mask = jnp.logical_and(attention_mask, ~jnp.eye(S, dtype=bool)[None])

    out = attention_head(x, wq, bq, wk, bk, wv, bv, attention_mask)
    out = jax.block_until_ready(out)

    ref = reference(x, wq, bq, wk, bk, wv, bv, attention_mask)
    assert out.shape == (B, S, dim_out)
    # Tolerance accounts for bf16 MXU operands (f32 accumulation) and the EUP
    # approximate reciprocal in the softmax normalization.
    max_err = float(jnp.max(jnp.abs(out - ref)))
    assert jnp.allclose(out, ref, atol=5e-2, rtol=5e-2), max_err

    print("KERNEL_OK")
</pallas_src>

<mosaic_0001>
module attributes {stable_mosaic.version = 11 : i64} {
  func.func @attention_head_kernel(%arg0: i32, %arg1: memref<2x8x32xf32, #tpu.memory_space<vmem>>, %arg2: memref<32x384xbf16, #tpu.memory_space<vmem>>, %arg3: memref<1x384xf32, #tpu.memory_space<vmem>>, %arg4: memref<2x8x8xbf16, #tpu.memory_space<vmem>>, %arg5: memref<2x8x128xf32, #tpu.memory_space<vmem>>) attributes {dimension_semantics = [#tpu.dimension_semantics<parallel>], iteration_bounds = array<i64: 1>, scalar_prefetch = 0 : i64, scratch_operands = 0 : i64, tpu.core_type = #tpu.core_type<tc>, window_params = [{transform_indices = @transform_0, window_bounds = array<i64: 2, 8, 32>}, {pipeline_mode = #tpu.pipeline_mode<synchronous>, transform_indices = @transform_1, window_bounds = array<i64: 32, 384>}, {pipeline_mode = #tpu.pipeline_mode<synchronous>, transform_indices = @transform_2, window_bounds = array<i64: 1, 384>}, {transform_indices = @transform_3, window_bounds = array<i64: 2, 8, 8>}, {transform_indices = @transform_4, window_bounds = array<i64: 2, 8, 128>}]} {
    %c0 = arith.constant 0 : index
    %c0_0 = arith.constant 0 : index
    %c0_1 = arith.constant 0 : index
    %0 = vector.load %arg1[%c0, %c0_0, %c0_1] : memref<2x8x32xf32, #tpu.memory_space<vmem>>, vector<2x8x32xf32>
    %1 = vector.shape_cast %0 : vector<2x8x32xf32> to vector<16x32xf32>
    %2 = arith.truncf %1 : vector<16x32xf32> to vector<16x32xbf16>
    %c0_2 = arith.constant 0 : index
    %c0_3 = arith.constant 0 : index
    %3 = vector.load %arg2[%c0_2, %c0_3] : memref<32x384xbf16, #tpu.memory_space<vmem>>, vector<32x384xbf16>
    %cst = arith.constant dense<0.000000e+00> : vector<16x384xf32>
    %4 = tpu.matmul %2, %3, %cst {dimension_numbers = #tpu.dot_dimension_numbers<[1], [0], [0], [1], [0, 0, 1, 1], [], []>} : vector<16x32xbf16>, vector<32x384xbf16>, vector<16x384xf32> -> vector<16x384xf32>
    %c0_4 = arith.constant 0 : index
    %c0_5 = arith.constant 0 : index
    %5 = vector.load %arg3[%c0_4, %c0_5] : memref<1x384xf32, #tpu.memory_space<vmem>>, vector<1x384xf32>
    %6 = vector.broadcast %5 : vector<1x384xf32> to vector<16x384xf32>
    %7 = arith.addf %4, %6 : vector<16x384xf32>
    %8 = vector.extract_strided_slice %7 {offsets = [0, 0], sizes = [16, 128], strides = [1, 1]} : vector<16x384xf32> to vector<16x128xf32>
    %9 = vector.shape_cast %8 : vector<16x128xf32> to vector<2x8x128xf32>
    %10 = vector.extract_strided_slice %7 {offsets = [0, 128], sizes = [16, 128], strides = [1, 1]} : vector<16x384xf32> to vector<16x128xf32>
    %11 = vector.shape_cast %10 : vector<16x128xf32> to vector<2x8x128xf32>
    %12 = vector.extract_strided_slice %7 {offsets = [0, 256], sizes = [16, 128], strides = [1, 1]} : vector<16x384xf32> to vector<16x128xf32>
    %13 = vector.shape_cast %12 : vector<16x128xf32> to vector<2x8x128xf32>
    %14 = arith.truncf %9 : vector<2x8x128xf32> to vector<2x8x128xbf16>
    %15 = arith.truncf %11 : vector<2x8x128xf32> to vector<2x8x128xbf16>
    %cst_6 = arith.constant dense<0.000000e+00> : vector<2x8x8xf32>
    %16 = tpu.matmul %14, %15, %cst_6 {dimension_numbers = #tpu.dot_dimension_numbers<[2], [2], [1], [1], [0, 0, 0, 1, 1, 1], [0], [0]>} : vector<2x8x128xbf16>, vector<2x8x128xbf16>, vector<2x8x8xf32> -> vector<2x8x8xf32>
    %c0_7 = arith.constant 0 : index
    %c0_8 = arith.constant 0 : index
    %c0_9 = arith.constant 0 : index
    %17 = vector.load %arg4[%c0_7, %c0_8, %c0_9] : memref<2x8x8xbf16, #tpu.memory_space<vmem>>, vector<2x8x8xbf16>
    %18 = arith.extf %17 : vector<2x8x8xbf16> to vector<2x8x8xf32>
    %19 = arith.addf %16, %18 : vector<2x8x8xf32>
    %cst_10 = arith.constant dense<0xFF800000> : vector<2x8xf32>
    %20 = vector.multi_reduction <maximumf>, %19, %cst_10 [2] : vector<2x8x8xf32> to vector<2x8xf32>
    %21 = vector.shape_cast %20 : vector<2x8xf32> to vector<2x8x1xf32>
    %22 = vector.broadcast %21 : vector<2x8x1xf32> to vector<2x8x8xf32>
    %23 = arith.subf %19, %22 : vector<2x8x8xf32>
    %24 = math.exp %23 : vector<2x8x8xf32>
    %cst_11 = arith.constant dense<0.000000e+00> : vector<2x8xf32>
    %25 = vector.multi_reduction <add>, %24, %cst_11 [2] : vector<2x8x8xf32> to vector<2x8xf32>
    %26 = vector.shape_cast %25 : vector<2x8xf32> to vector<2x8x1xf32>
    %27 = arith.truncf %24 : vector<2x8x8xf32> to vector<2x8x8xbf16>
    %28 = arith.truncf %13 : vector<2x8x128xf32> to vector<2x8x128xbf16>
    %cst_12 = arith.constant dense<0.000000e+00> : vector<2x8x128xf32>
    %29 = tpu.matmul %27, %28, %cst_12 {dimension_numbers = #tpu.dot_dimension_numbers<[2], [1], [1], [2], [0, 0, 0, 1, 1, 2], [0], [0]>} : vector<2x8x8xbf16>, vector<2x8x128xbf16>, vector<2x8x128xf32> -> vector<2x8x128xf32>
    %30 = tpu.reciprocal %26 {approx = true} : vector<2x8x1xf32> -> vector<2x8x1xf32>
    %31 = vector.broadcast %30 : vector<2x8x1xf32> to vector<2x8x128xf32>
    %32 = arith.mulf %29, %31 : vector<2x8x128xf32>
    %c0_13 = arith.constant 0 : index
    %c0_14 = arith.constant 0 : index
    %c0_15 = arith.constant 0 : index
    %33 = vector.load %arg5[%c0_13, %c0_14, %c0_15] : memref<2x8x128xf32, #tpu.memory_space<vmem>>, vector<2x8x128xf32>
    tpu.vector_store %arg5[%c0_13, %c0_14, %c0_15], %32 {strides = array<i32>} : memref<2x8x128xf32, #tpu.memory_space<vmem>>, vector<2x8x128xf32>,
    return
  }
  func.func @transform_0(%arg0: i32) -> (i32, i32, i32) {
    %c0_i32 = arith.constant 0 : i32
    %c0_i32_0 = arith.constant 0 : i32
    %c0_i32_1 = arith.constant 0 : i32
    return %arg0, %c0_i32, %c0_i32_0 : i32, i32, i32
  }
  func.func @transform_1(%arg0: i32) -> (i32, i32) {
    %c0_i32 = arith.constant 0 : i32
    %c0_i32_0 = arith.constant 0 : i32
    %c0_i32_1 = arith.constant 0 : i32
    return %c0_i32, %c0_i32_0 : i32, i32
  }
  func.func @transform_2(%arg0: i32) -> (i32, i32) {
    %c0_i32 = arith.constant 0 : i32
    %c0_i32_0 = arith.constant 0 : i32
    %c0_i32_1 = arith.constant 0 : i32
    return %c0_i32, %c0_i32_0 : i32, i32
  }
  func.func @transform_3(%arg0: i32) -> (i32, i32, i32) {
    %c0_i32 = arith.constant 0 : i32
    %c0_i32_0 = arith.constant 0 : i32
    %c0_i32_1 = arith.constant 0 : i32
    return %arg0, %c0_i32, %c0_i32_0 : i32, i32, i32
  }
  func.func @transform_4(%arg0: i32) -> (i32, i32, i32) {
    %c0_i32 = arith.constant 0 : i32
    %c0_i32_0 = arith.constant 0 : i32
    %c0_i32_1 = arith.constant 0 : i32
    return %arg0, %c0_i32, %c0_i32_0 : i32, i32, i32
  }
}

</mosaic_0001>

<bundles_post_ra>
// kernel: tpu_custom_call.1
= control target key start
LH: loop header
LB: loop body
LE: loop exit
PB: predicated region body
PF: predicated region fallthrough
CT: control target
= control target key end

     0   :  { %9 = vsyncpa [#allocation3], 0  ;;  %s678_s0 = inlined_call_operand.hbm [shape: f32[2,8,32], index: 0, kind: input, shape index: {}]   ;;  %s679_s1 = inlined_call_operand.hbm [shape: bf16[32,384], index: 1, kind: input, shape index: {}]   ;;  %s680_s2 = inlined_call_operand.vmem [shape: f32[1,384], index: 2, kind: input, shape index: {}]   ;;  %s681_s3 = inlined_call_operand.hbm [shape: bf16[2,8,8], index: 3, kind: input, shape index: {}]   ;;  %s682_s4 = inlined_call_operand.hbm [shape: f32[2,8,128], index: 4, kind: output, shape index: {}]  }
   0x1   :  { %10 = vsyncpa [#allocation6], 0 }
   0x2   :  { %11 = vsyncpa [#allocation4], 0  ;;  %s608_s15 = smov [#allocation5]  }
   0x3   :  { %s29_s16 = sshll.u32 %s608_s15, 4  ;;  %s30_s16 = int_to_ptr.vmem [resolvable:$true] %s29_s16 }
   0x4   :  { %s530_s17 = scalar_lea.vmem %s30_s16, 768  ;;  %p535_p1 = scmp.lt.s32.totalorder %s30_s16, %s30_s16 }
   0x5   :  { %p531_p0 = scmp.ne.s32.totalorder %s30_s16, %s530_s17  ;;  %p536_p2 = scmp.lt.s32.totalorder %s530_s17, %s530_s17 }
   0x7   :  { %p537_p3 = por %p536_p2, %p535_p1 }
   0x9   :  { %p538_p4 = pnand %p537_p3, %p531_p0 }
   0xb   :  { %541 = shalt.err (!%p538_p4)
}
   0xc   :  { %s609_s18 = smov 192   ;;  %s610_s19 = smov 12  }
   0xd   :  { %35 = dma.hbm_to_vmem [thread:$0]  %s679_s1, 768, %s30_s16, [#allocation6], %s609_s18, %s609_s18, %s610_s19  }
   0xe   :  { %s611_s22 = smov [#allocation2]  }
   0xf   :  { %s17_s23 = sshll.u32 %s611_s22, 4  ;;  %s18_s23 = int_to_ptr.vmem [resolvable:$true] %s17_s23 }
  0x10   :  { %s550_s24 = scalar_lea.vmem %s18_s23, 256  ;;  %p555_p6 = scmp.lt.s32.totalorder %s18_s23, %s18_s23 }
  0x11   :  { %p551_p5 = scmp.ne.s32.totalorder %s18_s23, %s550_s24  ;;  %p556_p7 = scmp.lt.s32.totalorder %s550_s24, %s550_s24 }
  0x13   :  { %p557_p8 = por %p556_p7, %p555_p6 }
  0x15   :  { %p558_p9 = pnand %p557_p8, %p551_p5 }
  0x17   :  { %561 = shalt.err (!%p558_p9)
}
  0x18   :  { %s612_s25 = smov 128   ;;  %s613_s26 = smov 8  }
  0x19   :  { %23 = dma.hbm_to_vmem [thread:$0]  %s678_s0, 256, %s18_s23, [#allocation3], %s612_s25, %s612_s25, %s613_s26  }
  0x1a   :  { %s614_s1 = smov [#allocation7]  }
  0x1b   :  { %s43_s29 = sshll.u32 %s614_s1, 4  ;;  %s44_s29 = int_to_ptr.vmem [resolvable:$true] %s43_s29 }
  0x1c   :  { %s570_s30 = scalar_lea.vmem %s44_s29, 128  ;;  %p575_p11 = scmp.lt.s32.totalorder %s44_s29, %s44_s29 }
  0x1d   :  { %p571_p10 = scmp.ne.s32.totalorder %s44_s29, %s570_s30  ;;  %p576_p12 = scmp.lt.s32.totalorder %s570_s30, %s570_s30 }
  0x1f   :  { %p577_p13 = por %p576_p12, %p575_p11 }
  0x21   :  { %p578_p0 = pnand %p577_p13, %p571_p10 }
  0x23   :  { %581 = shalt.err (!%p578_p0)
}
  0x24   :  { %s615_s5 = smov 64   ;;  %s616_s6 = smov 4  }
  0x25   :  { %49 = dma.hbm_to_vmem [thread:$0]  %s681_s3, 128, %s44_s29, [#allocation6], %s615_s5, %s615_s5, %s616_s6  }
  0x26   :  { %602 = dma.done.wait [#allocation3], 256  }
  0x27   :  { %603 = vsyncadd [#allocation3], 4294967040 }
  0x28   :  { %604 = dma.done.wait [#allocation6], 896  }
  0x29   :  { %605 = vsyncadd [#allocation6], 4294966400  ;;  %v617_v0 = vmov 0   ;;  %v618_v1 = vmov 0.0   ;;  %v506_v2 = vld [vmem:[#allocation5 + $0x1c] ss:$12 sps:$4 sm:$0xff]   ;;  %v73_v11 = vlaneseq }
  0x2a   :  { %156 = vmatprep.mubr.bf16.mxu0 %v617_v0  ;;  %461 = vmatprep.subr.bf16.mxu1 %v618_v1  ;;  %v508_v3 = vld [vmem:[#allocation5 + $0x18] ss:$12 sps:$4 sm:$0xff]   ;;  %v511_v5 = vld [vmem:[#allocation5] ss:$12 sps:$4 sm:$0xff]   ;;  %v60_v6 = vld [vmem:[#allocation2] sm:$0xff]  ;;  %vm120_vm0 = vcmask 261120  }
  0x2b   :  { %136 = vmatprep.subr.bf16.mxu0 %v506_v2  ;;  %v509_v4 = vld [vmem:[#allocation5 + $0x4] ss:$12 sps:$4 sm:$0xff]   ;;  %v61_v7 = vld [vmem:[#allocation2 + $0x8] sm:$0xff]  ;;  %v512_v8 = vld [vmem:[#allocation5 + $0x20] ss:$12 sps:$4 sm:$0xff]   ;;  %vm619_vm1 = vmmov 0  }
  0x2c   :  { %137 = vmatpush1.bf16.msra.mxu0 %v508_v3  ;;  %v62_v9 = vpack.c.bf16 %v61_v7, %v60_v6  ;;  %462 = vmatpush3.bf16.msra.mxu1 %v512_v8  ;;  %v513_v10 = vld [vmem:[#allocation5 + $0x8] ss:$12 sps:$4 sm:$0xff]   ;;  %v74_v12 = vshrl.u32 %v73_v11, 7  ;;  %v71_v14 = vld [vmem:[%s680_s2] sm:$0x7]  ;;  %vm322_vm2 = vcmask 1043456  }
  0x2d   :  { %138 = vmatprep.subr.bf16.mxu0 %v509_v4  ;;  %463 = vmatprep.subr.bf16.mxu1 %v618_v1  ;;  %v447_v42 = vld [vmem:[#allocation7] sm:$0xff]   ;;  %vm296_vm3 = vcmask 64512   ;;  %s620_s2 = smov [#allocation8]  }
  0x2e   :  { %465 = vmatprep.mubr.msk.bf16.mxu1 %vm619_vm1, %v618_v1  ;;  %v79_v13 = vsub.s32 1, %v74_v12  ;;  %v75_v16 = vsub.s32 0, %v74_v12  ;;  %v83_v30 = vsub.s32 2, %v74_v12  ;;  %v448_v43 = vunpack.c.l.bf16 %v447_v42  ;;  %s423_s9 = sshll.u32 %s620_s2, 4  ;;  %s424_s9 = int_to_ptr.vmem [resolvable:$true] %s423_s9 }
  0x2f   :  { %v449_v46 = vunpack.c.h.bf16 %v447_v42  ;;  %s582_s10 = scalar_lea.vmem %s424_s9, 256  ;;  %p587_p2 = scmp.lt.s32.totalorder %s424_s9, %s424_s9 }
  0x30   :  { %139 = vmatpush1.bf16.msra.mxu0 %v511_v5  ;;  %464 = vmatpush3.bf16.msra.mxu1 %v513_v10  ;;  %v80_v15 = vrot.slane %v71_v14, %v79_v13  ;;  %v76_v20 = vrot.slane %v71_v14, %v75_v16  ;;  %v84_v31 = vrot.slane %v71_v14, %v83_v30  ;;  %p583_p1 = scmp.ne.s32.totalorder %s424_s9, %s582_s10  ;;  %p588_p3 = scmp.lt.s32.totalorder %s582_s10, %s582_s10 }
  0x31   :  { %469 = vmatprep.subr.bf16.mxu0 %v618_v1  ;;  %475 = vmatprep.subr.bf16.mxu1 %v618_v1 }
  0x32   :  { %p589_p4 = por %p588_p3, %p587_p2 }
  0x33   :  { %442 = vmatmul.mubr.msk.bf16.vlgmr.msra.gmra.mxu0 %vm120_vm0, %v62_v9  ;;  %466 = vmatmul.mubr.msk.bf16.vlgmr.msra.gmra.mxu1 %vm120_vm0, %v62_v9 }
  0x34   :  { %471 = vmatprep.mubr.msk.bf16.mxu0 %vm619_vm1, %v618_v1  ;;  %477 = vmatprep.mubr.msk.bf16.mxu1 %vm619_vm1, %v618_v1  ;;  %p590_p5 = pnand %p589_p4, %p583_p1 }
  0xf3   :  { %v158_v17 = vpop.f32.mrf.mxu0  ;;  %v201_v32 = vpop.f32.mrf.mxu1 }
  0xf4   :  { %v159_v25 = vadd.f32 %v158_v17, %v76_v20  ;;  %v202_v33 = vadd.f32 %v201_v32, %v84_v31 }
  0xf5   :  { %v160_v18 = vpop.f32.mrf.mxu0  ;;  %v467_v34 = vpop.f32.mrf.mxu1 }
  0xf6   :  { %v161_v19 = vadd.f32 %v160_v18, %v80_v15  ;;  %v208_v27 = vpack.c.bf16 %v159_v25, %v159_v25  ;;  %v317_v35 = vpack.c.bf16 %v202_v33, %v202_v33 }
  0xf7   :  { %v162_v21 = vpop.f32.mrf.mxu0  ;;  %v204_v36 = vpop.f32.mrf.mxu1 }
  0xf8   :  { %v210_v22 = vpack.c.bf16 %v161_v19, %v161_v19  ;;  %v163_v28 = vadd.f32 %v162_v21, %v76_v20  ;;  %v324_v37 = vsel %vm322_vm2, %v317_v35, 0  ;;  %v205_v38 = vadd.f32 %v204_v36, %v84_v31 }
  0xf9   :  { %v164_v23 = vpop.f32.mrf.mxu0  ;;  %v468_v39 = vpop.f32.mrf.mxu1 }
  0xfa   :  { %v165_v24 = vadd.f32 %v164_v23, %v80_v15  ;;  %470 = vmatpush3.bf16.xpose.msra.mxu0 %v210_v22  ;;  %v209_v29 = vpack.c.bf16 %v163_v28, %v163_v28  ;;  %v318_v40 = vpack.c.bf16 %v205_v38, %v205_v38 }
  0xfb   :  { %481 = vmatprep.subr.bf16.mxu0 %v618_v1 }
  0xfc   :  { %v211_v26 = vpack.c.bf16 %v165_v24, %v165_v24  ;;  %v370_v41 = vsel %vm322_vm2, %v318_v40, 0 }
  0xfe   :  { %476 = vmatpush3.bf16.xpose.msra.mxu1 %v211_v26 }
  0xff   :  { %487 = vmatprep.subr.bf16.mxu1 %v618_v1 }
 0x101   :  { %472 = vmatmul.mubr.bf16.vlgmr.msra.gmra.mxu0 %v208_v27 }
 0x102   :  { %483 = vmatprep.mubr.msk.bf16.mxu0 %vm619_vm1, %v618_v1  ;;  %482 = vmatpush3.bf16.msra.mxu0 %v324_v37 }
 0x105   :  { %478 = vmatmul.mubr.bf16.vlgmr.msra.gmra.mxu1 %v209_v29 }
 0x106   :  { %489 = vmatprep.mubr.msk.bf16.mxu1 %vm619_vm1, %v618_v1  ;;  %488 = vmatpush3.bf16.msra.mxu1 %v370_v41 }
 0x1c1   :  { %v250_v44 = vpop.f32.mrf.mxu0 }
 0x1c2   :  { %v251_v45 = vadd.f32 %v448_v43, %v250_v44 }
 0x1c3   :  { %v473_v47 = vpop.f32.mrf.mxu0 }
 0x1c4   :  { %v297_v48 = vsel %vm296_vm3, %v251_v45, -inf }
 0x1c5   :  { %v290_v49 = vpop.f32.mrf.mxu1  ;;  %298 = vmax.xlane.f32.xlu0 %v297_v48  ;;  %v253_v50 = vpop.f32.mrf.mxu0 }
 0x1c6   :  { %v291_v51 = vadd.f32 %v449_v46, %v290_v49 }
 0x1c7   :  { %v474_v52 = vpop.f32.mrf.mxu0  ;;  %v479_v53 = vpop.f32.mrf.mxu1 }
 0x1c8   :  { %v300_v54 = vsel %vm296_vm3, %v291_v51, -inf }
 0x1c9   :  { %v293_v55 = vpop.f32.mrf.mxu1  ;;  %301 = vmax.xlane.f32.xlu0 %v300_v54 }
 0x1cb   :  { %v480_v56 = vpop.f32.mrf.mxu1 }
 0x24e   :  { %v299_v57 = vpop.xlane.xlu0 %298 }
 0x24f   :  { %v303_v58 = vsub.f32 %v251_v45, %v299_v57 }
 0x251   :  { %v305_v59 = vmul.f32 1.442695, %v303_v58 }
 0x252   :  { %v302_v60 = vpop.xlane.xlu0 %301 }
 0x253   :  { %514 = vpow2.f32 %v305_v59  ;;  %v304_v61 = vsub.f32 %v291_v51, %v302_v60 }
 0x255   :  { %v307_v62 = vmul.f32 1.442695, %v304_v61 }
 0x257   :  { %516 = vpow2.f32 %v307_v62 }
 0x260   :  { %v515_v63 = vpop.eup %514 }
 0x261   :  { %v309_v0 = vsel %vm296_vm3, %v515_v63, 0.0  ;;  %v315_v1 = vpack.c.bf16 %v515_v63, %v515_v63 }
 0x262   :  { %310 = vadd.xlane.f32.xlu1 %v309_v0 }
 0x263   :  { %484 = vmatmul.mubr.msk.bf16.vlgmr.msra.gmra.mxu0 %vm296_vm3, %v315_v1 }
 0x264   :  { %v517_v2 = vpop.eup %516 }
 0x265   :  { %v312_v3 = vsel %vm296_vm3, %v517_v2, 0.0  ;;  %v316_v4 = vpack.c.bf16 %v517_v2, %v517_v2 }
 0x266   :  { %313 = vadd.xlane.f32.xlu1 %v312_v3 }
 0x267   :  { %490 = vmatmul.mubr.msk.bf16.vlgmr.msra.gmra.mxu1 %vm296_vm3, %v316_v4 }
 0x2eb   :  { %v311_v5 = vpop.xlane.xlu1 %310 }
 0x2ec   :  { %518 = vrcp.f32 %v311_v5 }
 0x2ef   :  { %v314_v6 = vpop.xlane.xlu1 %313 }
 0x2f0   :  { %520 = vrcp.f32 %v314_v6 }
 0x2f9   :  { %v519_v7 = vpop.eup %518 }
 0x2fd   :  { %v521_v11 = vpop.eup %520 }
 0x323   :  { %v360_v8 = vpop.f32.mrf.mxu0 }
 0x324   :  { %v414_v9 = vmul.f32 %v519_v7, %v360_v8 }
 0x325   :  { %v485_v10 = vpop.f32.mrf.mxu0 }
 0x326   :  { %416 = vst [vmem:[#allocation8] sm:$0xff] %v414_v9 }
 0x327   :  { %v363_v12 = vpop.f32.mrf.mxu0  ;;  %v406_v13 = vpop.f32.mrf.mxu1 }
 0x328   :  { %v415_v14 = vmul.f32 %v521_v11, %v406_v13 }
 0x329   :  { %v486_v15 = vpop.f32.mrf.mxu0  ;;  %v491_v16 = vpop.f32.mrf.mxu1 }
 0x32a   :  { %417 = vst [vmem:[#allocation8 + $0x8] sm:$0xff] %v415_v14 }
 0x32b   :  { %v409_v17 = vpop.f32.mrf.mxu1 }
 0x32c   :  { %593 = shalt.err (!%p590_p5)
}
 0x32d   :  { %429 = dma.vmem_to_hbm [thread:$0]  %s424_s9, 256, %s682_s4, [#allocation4], %s612_s25, %s612_s25, %s613_s26   ;;  %v492_v18 = vpop.f32.mrf.mxu1 }
 0x32e   :  { %606 = dma.done.wait [#allocation4], 256  }
 0x32f   :  { %607 = vsyncadd [#allocation4], 4294967040 }
 0x330   :  { %433 = vsyncpa [#allocation3], 1 }
 0x331   :  { %434 = vsyncpa [#allocation6], 1 }
 0x332   :  { %435 = vsyncpa [#allocation4], 1 }

</bundles_post_ra>
